<compile_context>
chip_gen: v7x
topology: tpu7x:2x2x1
jax: 0.10.0
libtpu: 0.0.40
codegen_flags: <defaults>
</compile_context>

<pallas_src>
import functools

import jax
import jax.numpy as jnp
from jax.experimental import pallas as pl
from jax.experimental.pallas import tpu as pltpu

LANES = 128
TARGET_BLOCK_BYTES = 2 * 1024 * 1024  # per-buffer target; scale kernel uses <= ~8 MiB total


def _round_up(a, b):
    return -(-a // b) * b


# ----------------------- Kernel 1: parallel partial max ----------------------
def _partial_max_kernel(x_ref, o_ref, *, rows_valid, block_rows):
    i = pl.program_id(0)
    x = x_ref[...].astype(jnp.float32)
    # Mask rows beyond the real array extent (partial last grid block).
    row = jax.lax.broadcasted_iota(jnp.int32, x.shape, 0) + i * block_rows
    x = jnp.where(row < rows_valid, x, -jnp.inf)
    # Row-only reduction (pure VPU vmax, hidden under the input DMA); the
    # cross-lane/sublane reduce happens on the tiny partials in plain JAX.
    o_ref[...] = jnp.max(x.reshape(-1, 8, LANES), axis=0)[None]


def _partial_max(x2d, block_rows):
    rows = x2d.shape[0]
    g = pl.cdiv(rows, block_rows)
    kernel = functools.partial(
        _partial_max_kernel, rows_valid=rows, block_rows=block_rows)
    return pl.pallas_call(
        kernel,
        out_shape=jax.ShapeDtypeStruct((g, 8, LANES), jnp.float32),
        grid_spec=pltpu.PrefetchScalarGridSpec(
            num_scalar_prefetch=0,
            grid=(g,),
            in_specs=[pl.BlockSpec((block_rows, LANES), lambda i: (i, 0))],
            out_specs=pl.BlockSpec((1, 8, LANES), lambda i: (i, 0, 0)),
        ),
        compiler_params=pltpu.CompilerParams(
            dimension_semantics=("parallel",)),
    )(x2d)


# ------------------------- Kernel 2: scale + clamp ----------------------------
def _scale_clamp_kernel(scalars_ref, x_ref, o_ref):
    intensity = scalars_ref[0]
    abs_max = scalars_ref[1]
    x = x_ref[...].astype(jnp.float32)
    o_ref[...] = jnp.clip(x * intensity, 0.0, abs_max).astype(o_ref.dtype)


def _scale_clamp(x2d, scalars, block_rows, out_dtype):
    rows = x2d.shape[0]
    g = pl.cdiv(rows, block_rows)
    return pl.pallas_call(
        _scale_clamp_kernel,
        out_shape=jax.ShapeDtypeStruct((rows, LANES), out_dtype),
        grid_spec=pltpu.PrefetchScalarGridSpec(
            num_scalar_prefetch=1,
            grid=(g,),
            in_specs=[pl.BlockSpec((block_rows, LANES), lambda i, s: (i, 0))],
            out_specs=pl.BlockSpec((block_rows, LANES), lambda i, s: (i, 0)),
        ),
        compiler_params=pltpu.CompilerParams(
            dimension_semantics=("parallel",)),
    )(scalars, x2d)


# --------------------------------- Wrapper ------------------------------------
def random_intensity(img, key, intensity_range=(0.8, 1.2)):
    """Returns (clamp(img * u, 0, abs_max), u) with u ~ Uniform(intensity_range)."""
    orig_shape = img.shape
    orig_dtype = img.dtype
    # PyTorch promotes integer images to float when multiplied by a python float.
    # TODO(synk): if integer *outputs* are ever required, add jnp.round before a cast.
    out_dtype = orig_dtype if jnp.issubdtype(orig_dtype, jnp.floating) else jnp.float32

    flat = img.reshape(-1)
    total = flat.shape[0]

    in_itemsize = jnp.dtype(orig_dtype).itemsize
    out_itemsize = jnp.dtype(out_dtype).itemsize
    # Sublane packing of the input dtype: 8 rows (4B), 16 (2B), 32 (1B).
    row_align = max(8, 32 // max(in_itemsize, 1))

    rows = -(-total // LANES)
    padded_total = rows * LANES

    # Byte-targeted, dtype-aware block sizing (~2 MiB for the largest buffer).
    buf_itemsize = max(in_itemsize, out_itemsize)
    block_rows = max(
        row_align,
        (TARGET_BLOCK_BYTES // (LANES * buf_itemsize)) // row_align * row_align)
    block_rows = min(block_rows, _round_up(rows, row_align))
    # Ensure >= 2 grid blocks when possible so v7x can split across both TCs.
    if rows <= block_rows and rows > row_align:
        block_rows = _round_up(-(-rows // 2), row_align)

    # Zero-copy (rows, 128) view when numel is lane-divisible; otherwise pad
    # only to the next lane multiple (zero padding cannot change the abs_max
    # bucket: max(real, 0) lands in the same {<=1, <=255, >255} bucket).
    # TODO(synk): the residual pad here could be fused into the pallas operand
    # read via CompilerParams(allow_input_fusion=...) to avoid the copy.
    if padded_total != total:
        flat = jnp.pad(flat, (0, padded_total - total))
    x2d = flat.reshape(rows, LANES)

    # Pass 1: per-block partial maxima (parallel), tiny reduce in plain JAX.
    gmax = jnp.max(_partial_max(x2d, block_rows))

    # abs_max bucket selection hoisted out of the kernel.
    # TODO(synk): the PyTorch ValueError branch is unreachable for real-valued
    # maxima (any max > 255 maps to 65535), so no error path is emitted.
    abs_max = jnp.where(gmax <= 1.0, jnp.float32(1.0),
                        jnp.where(gmax <= 255.0, jnp.float32(255.0),
                                  jnp.float32(65535.0)))

    lo, hi = intensity_range
    intensity = jax.random.uniform(key, (), minval=lo, maxval=hi,
                                   dtype=jnp.float32)
    scalars = jnp.stack([intensity, abs_max]).astype(jnp.float32)

    # Pass 2: elementwise scale + clamp (tail garbage in a partial last block
    # is dropped by the clipped output writeback).
    out2d = _scale_clamp(x2d, scalars, block_rows, out_dtype)
    if padded_total != total:
        out = out2d.reshape(-1)[:total].reshape(orig_shape)
    else:
        out = out2d.reshape(orig_shape)
    return out, intensity


# ---------------------------------- Demo --------------------------------------
if __name__ == "__main__":
    key = jax.random.PRNGKey(0)
    k_img, k_int = jax.random.split(key)

    # NCHW image in the "0..255" range (so abs_max should resolve to 255).
    x = jax.random.uniform(k_img, (2, 4, 16, 16), dtype=jnp.float32) * 200.0

    out, intensity = random_intensity(x, k_int)
    out = jax.block_until_ready(out)

    # Reference check in plain JAX.
    gmax = jnp.max(x)
    abs_max = jnp.where(gmax <= 1.0, 1.0,
                        jnp.where(gmax <= 255.0, 255.0, 65535.0))
    ref = jnp.clip(x * intensity, 0.0, abs_max)
    assert out.shape == x.shape and out.dtype == x.dtype
    assert 0.8 <= float(intensity) <= 1.2
    assert jnp.allclose(out, ref, rtol=1e-6, atol=1e-5)

    print("KERNEL_OK")
</pallas_src>

<mosaic_0001>
module attributes {stable_mosaic.version = 11 : i64} {
  func.func @_partial_max_kernel(%arg0: i32, %arg1: memref<8x128xf32, #tpu.memory_space<vmem>>, %arg2: memref<1x8x128xf32, #tpu.memory_space<vmem>>) attributes {dimension_semantics = [#tpu.dimension_semantics<parallel>], iteration_bounds = array<i64: 2>, scalar_prefetch = 0 : i64, scratch_operands = 0 : i64, tpu.core_type = #tpu.core_type<tc>, window_params = [{transform_indices = @transform_0, window_bounds = array<i64: 8, 128>}, {transform_indices = @transform_1, window_bounds = array<i64: 1, 8, 128>}]} {
    %c0 = arith.constant 0 : index
    %c0_0 = arith.constant 0 : index
    %0 = vector.load %arg1[%c0, %c0_0] : memref<8x128xf32, #tpu.memory_space<vmem>>, vector<8x128xf32>
    %1 = tpu.iota {dimensions = array<i32: 0>} : vector<8x128xi32>
    %c8_i32 = arith.constant 8 : i32
    %2 = arith.muli %arg0, %c8_i32 : i32
    %3 = vector.broadcast %2 : i32 to vector<8x128xi32>
    %4 = arith.addi %1, %3 : vector<8x128xi32>
    %c16_i32 = arith.constant 16 : i32
    %5 = vector.broadcast %c16_i32 : i32 to vector<8x128xi32>
    %6 = arith.cmpi slt, %4, %5 : vector<8x128xi32>
    %cst = arith.constant 0xFF800000 : f32
    %7 = vector.broadcast %cst : f32 to vector<8x128xf32>
    %8 = arith.select %6, %0, %7 : vector<8x128xi1>, vector<8x128xf32>
    %9 = vector.shape_cast %8 : vector<8x128xf32> to vector<1x8x128xf32>
    %cst_1 = arith.constant dense<0xFF800000> : vector<8x128xf32>
    %10 = vector.multi_reduction <maximumf>, %9, %cst_1 [0] : vector<1x8x128xf32> to vector<8x128xf32>
    %11 = vector.shape_cast %10 : vector<8x128xf32> to vector<1x8x128xf32>
    %c0_2 = arith.constant 0 : index
    %c0_3 = arith.constant 0 : index
    %c0_4 = arith.constant 0 : index
    %12 = vector.load %arg2[%c0_2, %c0_3, %c0_4] : memref<1x8x128xf32, #tpu.memory_space<vmem>>, vector<1x8x128xf32>
    tpu.vector_store %arg2[%c0_2, %c0_3, %c0_4], %11 {strides = array<i32>} : memref<1x8x128xf32, #tpu.memory_space<vmem>>, vector<1x8x128xf32>,
    return
  }
  func.func @transform_0(%arg0: i32) -> (i32, i32) {
    %c0_i32 = arith.constant 0 : i32
    %c0_i32_0 = arith.constant 0 : i32
    return %arg0, %c0_i32 : i32, i32
  }
  func.func @transform_1(%arg0: i32) -> (i32, i32, i32) {
    %c0_i32 = arith.constant 0 : i32
    %c0_i32_0 = arith.constant 0 : i32
    %c0_i32_1 = arith.constant 0 : i32
    return %arg0, %c0_i32, %c0_i32_0 : i32, i32, i32
  }
}

</mosaic_0001>

<bundles_post_ra>
// kernel: tpu_custom_call.1
= control target key start
LH: loop header
LB: loop body
LE: loop exit
PB: predicated region body
PF: predicated region fallthrough
CT: control target
= control target key end

     0   :  { %6 = vsyncpa [#allocation3], 0  ;;  %s556_s0 = inlined_call_operand.hbm [shape: f32[16,128], index: 0, kind: input, shape index: {}]   ;;  %s557_s1 = inlined_call_operand.hbm [shape: f32[2,8,128], index: 1, kind: output, shape index: {}]  }
   0x1   :  { %8 = vsyncpa [#allocation3 + $0x1], 0 }
   0x2   :  { %9 = vsyncpa [#allocation4], 0 }
   0x3   :  { %11 = vsyncpa [#allocation4 + $0x1], 0  ;;  %s394_s6 = smov 0   ;;  %s396_s7 = smov 0  }
   0x4   :  { %s398_s8 = smov 0   ;;  %s400_s9 = smov 0  }
   0x5 LB: > { %s415_s10 = sadd.s32 4294967295, %s380_s9   ;;  %s225_s11 = sadd.s32 4294967294, %s380_s9   ;;  %s380_s9 = sphi %s400_s9, %s572_s9   ;;  %s376_s8 = sphi %s398_s8, %s571_s8   ;;  %s372_s7 = sphi %s396_s7, %s570_s7   ;;  %s368_s6 = sphi %s394_s6, %s569_s6  }
   0x6   : > { %s419_s12 = sadd.s32 1, %s380_s9   ;;  %s24_s13 = sadd.s32 1, %s376_s8 }
   0x7   : > { %s21_s14 = ssub.s32 %s380_s9, %s419_s12  ;;  %p31_p0 = scmp.ne.s32.totalorder %s376_s8, %s372_s7 }
   0x8   : > { %p22_p1 = scmp.eq.s32.totalorder %s21_s14, 0  ;;  %p32_p2 = scmp.eq.s32.totalorder %s380_s9, 0 }
   0x9   : > { %p37_p3 = scmp.ne.s32.totalorder %s372_s7, %s368_s6  ;;  %p38_p4 = scmp.eq.s32.totalorder %s415_s10, 0 }
   0xa   : > { %s431_s15 = scalar_select %p22_p1, %s376_s8, %s24_s13  }
   0xb   : > { %p433_p5 = por %p32_p2, %p31_p0  ;;  %p437_p6 = por %p38_p4, %p37_p3 }
   0xc   : > { %p61_p7 = scmp.eq.s32.totalorder %s415_s10, 1  ;;  %p67_p8 = scmp.eq.s32.totalorder %s225_s11, 1 }
   0xd   : > { %p250_p10 = scmp.lt.s32.totalorder %s380_s9, 2  ;;  %s87_s20 = sand.u32 1, %s376_s8  }
   0xe   : > { %p444_p11 = por %p61_p7, %p31_p0  ;;  %p448_p12 = por %p67_p8, %p37_p3 }
   0xf   : > { %s229_s21 = sshll.u32 %s380_s9, 7  ;;  %s228_s22 = sshll.u32 %s87_s20, 3 }
  0x10   : > { %s561_s18 = scalar_select %p444_p11, 1, 0 }
  0x11   : > { %s562_s19 = scalar_select %p448_p12, 1, 0 }
  0x12   : > { %s457_s25 = scalar_lea.hbm %s556_s0, %s229_s21  ;;  %s91_s26 = scalar_lea.vmem [#allocation2], %s228_s22 }
  0x13   : > { %s98_s27 = sshll.u32 %s91_s26, 4  ;;  %p461_p13 = pnand %p250_p10, %p433_p5  ;;  %s465_s27 = int_to_ptr.vmem [resolvable:$true] %s98_s27 }
  0x14   : > { %s88_s29 = scalar_lea.sflag [#allocation3], %s87_s20  ;;  %s284_s30 = scalar_lea.hbm %s457_s25, 128 }
  0x15   : > { %p285_p2 = scmp.ne.s32.totalorder %s457_s25, %s284_s30  ;;  %p286_p3 = pneg %p461_p13 }
  0x16   : > { %s289_s4 = scalar_lea.hbm %s556_s0, 256  ;;  %p290_p5 = scmp.lt.u32.totalorder %s457_s25, %s556_s0 }
  0x17   : > { %p287_p4 = pnand %p286_p3, %p285_p2  ;;  %p291_p8 = scmp.lt.u32.totalorder %s289_s4, %s284_s30 }
  0x18   : > { %p293_p9 = scmp.lt.u32.totalorder %s284_s30, %s457_s25 }
  0x19   : > { %p288_p7 = pneg %p287_p4  ;;  %p292_p10 = por %p291_p8, %p290_p5 }
  0x1b   : > { %p294_p0 = por %p293_p9, %p292_p10 }
  0x1d   : > { %p295_p1 = pnand %p294_p0, %p288_p7 }
  0x1f   : > { %298 = shalt.err (!%p295_p1)
}
  0x20   : > { %s299_s13 = scalar_lea.vmem %s465_s27, 128  ;;  %s382_s14 = smov [#allocation2]  }
  0x21   : > { %p300_p2 = scmp.ne.s32.totalorder %s465_s27, %s299_s13  ;;  %s304_s16 = sshll.u32 %s382_s14, 4  ;;  %s305_s16 = int_to_ptr.vmem [resolvable:$false] %s304_s16 }
  0x22   : > { %s306_s20 = scalar_lea.vmem %s305_s16, 256  ;;  %p307_p11 = scmp.lt.s32.totalorder %s465_s27, %s305_s16 }
  0x23   : > { %p302_p4 = pnand %p300_p2, %p286_p3  ;;  %p308_p5 = scmp.lt.s32.totalorder %s306_s20, %s299_s13 }
  0x25   : > { %p303_p12 = pneg %p302_p4  ;;  %p309_p8 = por %p308_p5, %p307_p11 }
  0x27   : > { %p310_p9 = pnand %p309_p8, %p303_p12 }
  0x29   : > { %313 = shalt.err (!%p310_p9)
}
  0x2a   : > { %245 = dma.hbm_to_vmem [thread:$0]  (!%p461_p13), %s457_s25, 128, %s465_s27, %s88_s29  }
  0x2b   : > { %p564_p0 = scmp.lt.s32.totalorder %s380_s9, 3  ;;  %p565_p1 = scmp.ge.s32.totalorder %s380_s9, 1 }
  0x2d   : > { %p104_p3 = pnand %p565_p1, %p564_p0 }
  0x2e   : > { %s499_s21 = sand.u32 (!%p104_p3), 1, %s372_s7  }
  0x2f   : > { %107 = sbr.rel (%p104_p3) target bundleno = 81 (0x51), region = 24  ;;  %s231_s22 = sshll.u32 (!%p104_p3), %s499_s21, 3 }
  0x30   : > { %s110_s23 = scalar_lea.sflag (!%p104_p3), [#allocation3], %s499_s21  ;;  %s113_s24 = scalar_lea.vmem (!%p104_p3), [#allocation2], %s231_s22 }
  0x36   : > { %359 = dma.done.wait (%p437_p6), %s110_s23, 128  }
  0x37   : > { %361 = vsyncadd (%p437_p6), %s110_s23, 4294967168  ;;  %v133_v0 = vlaneseq  ;;  %s233_s25 = sshll.u32 %s415_s10, 3  ;;  %s131_s26 = scalar_lea.vmem [#allocation5], %s231_s22  ;;  %v132_v4 = vld [vmem:[%s113_s24] sm:$0xff] }
  0x38   : > { %v136_v1 = vstv %s233_s25  ;;  %s155_s27 = sshll.u32 %s131_s26, 4  ;;  %s235_s28 = sshll.u32 %s415_s10, 7  ;;  %s509_s27 = int_to_ptr.vmem [resolvable:$true] %s155_s27 }
  0x39   : > { %v134_v2 = vshrl.u32 %v133_v0, 7  ;;  %s514_s17 = scalar_lea.hbm %s557_s1, %s235_s28  ;;  %s142_s2 = scalar_lea.sflag [#allocation4], %s499_s21 }
  0x3a   : > { %s314_s3 = scalar_lea.vmem %s509_s27, 128  ;;  %p566_p11 = scmp.ne.s32.totalorder %s561_s18, 0 }
  0x3b   : > { %v137_v3 = vadd.s32 %v136_v1, %v134_v2  ;;  %p315_p6 = scmp.ne.s32.totalorder %s509_s27, %s314_s3  ;;  %s383_s10 = smov [#allocation5]  }
  0x3c   : > { %s318_s4 = sshll.u32 %s383_s10, 4  ;;  %s319_s4 = int_to_ptr.vmem [resolvable:$false] %s318_s4 }
  0x3d   : > { %vm138_vm0 = vcmp.lt.s32.totalorder %v137_v3, 16  ;;  %p316_p12 = pnand %p315_p6, %p566_p11  ;;  %s320_s5 = scalar_lea.vmem %s319_s4, 256 }
  0x3e   : > { %v139_v5 = vsel %vm138_vm0, %v132_v4, -inf  ;;  %p321_p7 = scmp.lt.s32.totalorder %s509_s27, %s319_s4  ;;  %p322_p10 = scmp.lt.s32.totalorder %s320_s5, %s314_s3 }
  0x3f   : > { %140 = vst [vmem:[%s131_s26] sm:$0xff] %v139_v5  ;;  %p317_p13 = pneg %p316_p12 }
  0x40   : > { %p323_p2 = por %p322_p10, %p321_p7 }
  0x42   : > { %p324_p4 = pnand %p323_p2, %p317_p13 }
  0x44   : > { %327 = shalt.err (!%p324_p4)
}
  0x45   : > { %s328_s11 = scalar_lea.hbm %s514_s17, 128  ;;  %s332_s16 = scalar_lea.hbm %s557_s1, 256 }
  0x46   : > { %p329_p5 = scmp.ne.s32.totalorder %s514_s17, %s328_s11  ;;  %p333_p0 = scmp.lt.u32.totalorder %s514_s17, %s557_s1 }
  0x47   : > { %p334_p1 = scmp.lt.u32.totalorder %s332_s16, %s328_s11  ;;  %p336_p6 = scmp.lt.u32.totalorder %s328_s11, %s514_s17 }
  0x48   : > { %p330_p8 = pnand %p329_p5, %p566_p11 }
  0x49   : > { %p335_p3 = por %p334_p1, %p333_p0 }
  0x4a   : > { %p331_p9 = pneg %p330_p8 }
  0x4b   : > { %p337_p12 = por %p336_p6, %p335_p3 }
  0x4d   : > { %p338_p13 = pnand %p337_p12, %p331_p9 }
  0x4f   : > { %341 = shalt.err (!%p338_p13)
}
  0x50   : > { %240 = dma.vmem_to_hbm [thread:$0]  (%p566_p11), %s509_s27, 128, %s514_s17, %s142_s2  }
  0x51 PF: > { %s167_s22 = sand.u32 1, %s368_s6   ;;  %p567_p7 = scmp.ne.s32.totalorder %s562_s19, 0 }
  0x52   : > { %p568_p10 = scmp.ge.s32.totalorder %s380_s9, 2  ;;  %s168_s23 = scalar_lea.sflag [#allocation4], %s167_s22 }
  0x54   : > { %p247_p2 = pnand %p568_p10, %p567_p7 }
  0x56   : > { %363 = dma.done.wait (!%p247_p2), %s168_s23, 128  }
  0x57   : > { %365 = vsyncadd (!%p247_p2), %s168_s23, 4294967168  ;;  %p14_p4 = scmp.ge.s32.totalorder %s419_s12, 4   ;;  %s569_s6 = smov %s372_s7 }
  0x58   : > { %s570_s7 = smov %s376_s8  ;;  %s571_s8 = smov %s431_s15 }
  0x59   : > { %s572_s9 = smov %s419_s12  ;;  %16 = sbr.rel (!%p14_p4) target bundleno = 5 (0x5), region = 69 }
  0x60   :  { %173 = vsyncpa [#allocation3], 1 }
  0x61   :  { %175 = vsyncpa [#allocation3 + $0x1], 1 }
  0x62   :  { %176 = vsyncpa [#allocation4], 1 }
  0x63   :  { %178 = vsyncpa [#allocation4 + $0x1], 1 }

</bundles_post_ra>
